<compile_context>
chip_gen: v5e
topology: v5e:2x2
jax: 0.10.0
libtpu: 0.0.40
codegen_flags: <defaults>
</compile_context>

<pallas_src>
import functools

import jax
import jax.numpy as jnp
from jax.experimental import pallas as pl
from jax.experimental.pallas import tpu as pltpu


def _gbuffer_conv_kernel(x_ref, g_ref, wg_ref, bg_ref, wsb_ref, bsb_ref, o_ref):
    """One (sample, HW-tile) block.

    x_ref  : (1, Cx, T)   image features (any float dtype)
    g_ref  : (1, Cg, T)   G-buffer channels (any float dtype)
    wg_ref : (Ce, Cg) bf16, bg_ref : (Ce, 1) f32        g-buffer embedding 1x1 conv
    wsb_ref: (2*Cx, Ce) bf16, bsb_ref: (2*Cx, 1) f32    fused, pre-scaled
                                                        [-0.1*ws ; 0.1*wb] convs
    o_ref  : (1, Cx, T)
    """
    cx = o_ref.shape[1]
    mm_dtype = wg_ref.dtype

    x = x_ref[0].astype(jnp.float32)               # (Cx, T) f32 math (v5e-safe)
    g = g_ref[0].astype(mm_dtype)                  # (Cg, T) bf16 MXU operand

    # gbuf_proc: 1x1 conv + ReLU  -> (Ce, T), f32 accumulation.
    ge = jnp.dot(wg_ref[...], g, preferred_element_type=jnp.float32) + bg_ref[...]
    ge = jnp.maximum(ge, 0.0)

    # Fused, pre-scaled scale|bias 1x1 convs -> (2*Cx, T); split along sublanes
    # (8-aligned for Cx=8).
    sb = jnp.dot(wsb_ref[...], ge.astype(mm_dtype),
                 preferred_element_type=jnp.float32) + bsb_ref[...]
    scale_m = sb[:cx]                              # == -0.1 * Conv_s(ge)
    bias_p = sb[cx:]                               # == +0.1 * Conv_b(ge)

    # Module forward with constants folded:
    #   x*(1 - 0.1*s) + 0.1*b  ==  x + x*scale_m + bias_p
    o_ref[0] = (x + x * scale_m + bias_p).astype(o_ref.dtype)


def _pick_hw_tile(hw, cap):
    """Lane tile along HW: whole extent if it fits, else a 512-multiple cap."""
    if hw <= cap:
        return hw
    t = cap - (cap % 512)
    return max(t, 512)


@functools.partial(jax.jit, static_argnames=("tile_hw",))
def gbuffer_conv(x_nchw, g_nchw, params, *, tile_hw=32768):
    """x_nchw: (N, Cx, H, W); g_nchw: (N, Cg, H, W) -> (N, Cx, H, W) (x's dtype)."""
    N, Cx, H, W = x_nchw.shape
    _, Cg, _, _ = g_nchw.shape
    HW = H * W
    Ce = params["wg"].shape[0]

    # NCHW -> (N, C, HW): pure reshape, no transpose / HBM pass.
    x = x_nchw.reshape(N, Cx, HW)
    g = g_nchw.reshape(N, Cg, HW)

    # Fold the 0.1 gain and the "1 -" sign into the fused [scale; bias] weights
    # (tiny one-off ops on (Cx,Ce)/(Cx,1) arrays), cast MXU operands to bf16 once.
    mm_dtype = jnp.bfloat16
    wg = params["wg"].astype(mm_dtype)                                   # (Ce, Cg)
    bg = params["bg"].astype(jnp.float32)                                # (Ce, 1)
    wsb = jnp.concatenate([-0.1 * params["ws"], 0.1 * params["wb"]],
                          axis=0).astype(mm_dtype)                       # (2Cx, Ce)
    bsb = jnp.concatenate([-0.1 * params["bs"], 0.1 * params["bb"]],
                          axis=0).astype(jnp.float32)                    # (2Cx, 1)

    T = _pick_hw_tile(HW, tile_hw)
    num_t = -(-HW // T)

    # VMEM budget: double-buffered x/g/out tiles + f32 ge/sb intermediates +
    # bf16 operand copies.  Cap at 40 MiB (headroom on v7x's 64 MiB part).
    x_it, g_it, o_it = x.dtype.itemsize, g.dtype.itemsize, x_nchw.dtype.itemsize
    step_bytes = T * (2 * (Cx * x_it + Cg * g_it + Cx * o_it)
                      + 4 * (Ce + 2 * Cx)
                      + 2 * (Cg + Ce))
    vmem_limit = int(min(40 * 1024 * 1024,
                         max(16 * 1024 * 1024, 2 * step_bytes)))

    cost = pl.CostEstimate(
        flops=2 * N * HW * (Cg * Ce + Ce * 2 * Cx),
        transcendentals=0,
        bytes_accessed=N * HW * (Cx * x_it + Cg * g_it + Cx * o_it),
    )

    full = lambda shape: pl.BlockSpec(shape, lambda n, t: (0,) * len(shape))

    out = pl.pallas_call(
        _gbuffer_conv_kernel,
        out_shape=jax.ShapeDtypeStruct((N, Cx, HW), x_nchw.dtype),
        grid=(N, num_t),
        in_specs=[
            pl.BlockSpec((1, Cx, T), lambda n, t: (n, 0, t)),   # x
            pl.BlockSpec((1, Cg, T), lambda n, t: (n, 0, t)),   # g
            full((Ce, Cg)),                                     # wg (bf16)
            full((Ce, 1)),                                      # bg (f32)
            full((2 * Cx, Ce)),                                 # wsb (fused, bf16)
            full((2 * Cx, 1)),                                  # bsb (fused, f32)
        ],
        out_specs=pl.BlockSpec((1, Cx, T), lambda n, t: (n, 0, t)),
        compiler_params=pltpu.CompilerParams(
            dimension_semantics=("parallel", "parallel"),
            vmem_limit_bytes=vmem_limit),
        cost_estimate=cost,
    )(x, g, wg, bg, wsb, bsb)

    return out.reshape(N, Cx, H, W)


def init_params(key, dim_x, dim_g, dim_e):
    """Deterministic init. 1x1 conv weights stored as (Cout, Cin), biases (Cout, 1)."""
    k = jax.random.split(key, 6)
    s = lambda fan_in: 1.0 / jnp.sqrt(float(fan_in))
    u = lambda kk, shape, fi: jax.random.uniform(kk, shape, jnp.float32, -s(fi), s(fi))
    return {
        "wg": u(k[0], (dim_e, dim_g), dim_g),
        "bg": u(k[1], (dim_e, 1), dim_g),
        "ws": u(k[2], (dim_x, dim_e), dim_e),
        "bs": u(k[3], (dim_x, 1), dim_e),
        "wb": u(k[4], (dim_x, dim_e), dim_e),
        "bb": u(k[5], (dim_x, 1), dim_e),
    }


def _reference_f32(x, g, p):
    """Pure-JAX f32 reference of GBufferConv.forward (NCHW), as in the module."""
    def conv1x1(t, w, b):
        return jnp.einsum("oc,nchw->nohw", w, t) + b.reshape(1, -1, 1, 1)
    ge = jax.nn.relu(conv1x1(g, p["wg"], p["bg"]))
    scale = conv1x1(ge, p["ws"], p["bs"])
    bias = conv1x1(ge, p["wb"], p["bb"])
    return x * (1.0 - 0.1 * scale) + 0.1 * bias


def _reference_matched(x, g, p):
    """Reference with the kernel's exact math: folded constants, bf16 matmul
    operands, f32 accumulation.  Used for a tight numerical check."""
    N, Cg, H, W = g.shape
    gf = g.reshape(N, Cg, H * W).astype(jnp.bfloat16)
    wg = p["wg"].astype(jnp.bfloat16)
    ge = jnp.einsum("ec,ncT->neT", wg, gf,
                    preferred_element_type=jnp.float32) + p["bg"][None]
    ge = jnp.maximum(ge, 0.0)
    ge_b = ge.astype(jnp.bfloat16)
    ws = (-0.1 * p["ws"]).astype(jnp.bfloat16)
    wb = (0.1 * p["wb"]).astype(jnp.bfloat16)
    scale_m = jnp.einsum("oe,neT->noT", ws, ge_b,
                         preferred_element_type=jnp.float32) + (-0.1 * p["bs"])[None]
    bias_p = jnp.einsum("oe,neT->noT", wb, ge_b,
                        preferred_element_type=jnp.float32) + (0.1 * p["bb"])[None]
    xf = x.reshape(N, -1, H * W)
    return (xf + xf * scale_m + bias_p).reshape(x.shape)


if __name__ == "__main__":
    N, dim_x, dim_g, dim_e, H, W = 2, 8, 4, 8, 16, 16

    key = jax.random.PRNGKey(0)
    kx, kg, kp = jax.random.split(key, 3)
    x = jax.random.normal(kx, (N, dim_x, H, W), jnp.float32)
    g = jax.random.normal(kg, (N, dim_g, H, W), jnp.float32)
    params = init_params(kp, dim_x, dim_g, dim_e)

    out = gbuffer_conv(x, g, params)
    jax.block_until_ready(out)
    assert out.shape == (N, dim_x, H, W)

    # Tight check: kernel matches its own math pipeline (folded constants,
    # bf16 MXU operands, f32 accumulation) essentially exactly.
    ref_tight = _reference_matched(x, g, params)
    assert jnp.max(jnp.abs(out - ref_tight)) < 1e-3

    # Semantic check vs. the f32 PyTorch-equivalent forward; the only deviation
    # is bf16 rounding of the K=4/8 matmul operands (review-sanctioned).
    ref_f32 = _reference_f32(x, g, params)
    assert jnp.max(jnp.abs(out - ref_f32)) < 5e-2

    print("KERNEL_OK")
</pallas_src>

<mosaic_0001>
module attributes {stable_mosaic.version = 11 : i64} {
  func.func @_gbuffer_conv_kernel(%arg0: i32, %arg1: i32, %arg2: memref<1x8x256xf32, #tpu.memory_space<vmem>>, %arg3: memref<1x4x256xf32, #tpu.memory_space<vmem>>, %arg4: memref<8x4xbf16, #tpu.memory_space<vmem>>, %arg5: memref<8x1xf32, #tpu.memory_space<vmem>>, %arg6: memref<16x8xbf16, #tpu.memory_space<vmem>>, %arg7: memref<16x1xf32, #tpu.memory_space<vmem>>, %arg8: memref<1x8x256xf32, #tpu.memory_space<vmem>>) attributes {dimension_semantics = [#tpu.dimension_semantics<parallel>, #tpu.dimension_semantics<parallel>], iteration_bounds = array<i64: 2, 1>, scalar_prefetch = 0 : i64, scratch_operands = 0 : i64, tpu.core_type = #tpu.core_type<tc>, window_params = [{transform_indices = @transform_0, window_bounds = array<i64: 1, 8, 256>}, {transform_indices = @transform_1, window_bounds = array<i64: 1, 4, 256>}, {pipeline_mode = #tpu.pipeline_mode<synchronous>, transform_indices = @transform_2, window_bounds = array<i64: 8, 4>}, {pipeline_mode = #tpu.pipeline_mode<synchronous>, transform_indices = @transform_3, window_bounds = array<i64: 8, 1>}, {pipeline_mode = #tpu.pipeline_mode<synchronous>, transform_indices = @transform_4, window_bounds = array<i64: 16, 8>}, {pipeline_mode = #tpu.pipeline_mode<synchronous>, transform_indices = @transform_5, window_bounds = array<i64: 16, 1>}, {transform_indices = @transform_6, window_bounds = array<i64: 1, 8, 256>}]} {
    %c0 = arith.constant 0 : index
    %c0_0 = arith.constant 0 : index
    %c0_1 = arith.constant 0 : index
    %0 = vector.load %arg2[%c0, %c0_0, %c0_1] : memref<1x8x256xf32, #tpu.memory_space<vmem>>, vector<1x8x256xf32>
    %1 = vector.shape_cast %0 : vector<1x8x256xf32> to vector<8x256xf32>
    %c0_2 = arith.constant 0 : index
    %c0_3 = arith.constant 0 : index
    %c0_4 = arith.constant 0 : index
    %2 = vector.load %arg3[%c0_2, %c0_3, %c0_4] : memref<1x4x256xf32, #tpu.memory_space<vmem>>, vector<1x4x256xf32>
    %3 = vector.shape_cast %2 : vector<1x4x256xf32> to vector<4x256xf32>
    %4 = arith.truncf %3 : vector<4x256xf32> to vector<4x256xbf16>
    %c0_5 = arith.constant 0 : index
    %c0_6 = arith.constant 0 : index
    %5 = vector.load %arg4[%c0_5, %c0_6] : memref<8x4xbf16, #tpu.memory_space<vmem>>, vector<8x4xbf16>
    %cst = arith.constant dense<0.000000e+00> : vector<8x256xf32>
    %6 = tpu.matmul %5, %4, %cst {dimension_numbers = #tpu.dot_dimension_numbers<[1], [0], [0], [1], [0, 0, 1, 1], [], []>} : vector<8x4xbf16>, vector<4x256xbf16>, vector<8x256xf32> -> vector<8x256xf32>
    %c0_7 = arith.constant 0 : index
    %c0_8 = arith.constant 0 : index
    %7 = vector.load %arg5[%c0_7, %c0_8] : memref<8x1xf32, #tpu.memory_space<vmem>>, vector<8x1xf32>
    %8 = vector.broadcast %7 : vector<8x1xf32> to vector<8x256xf32>
    %9 = arith.addf %6, %8 : vector<8x256xf32>
    %cst_9 = arith.constant 0.000000e+00 : f32
    %10 = vector.broadcast %cst_9 : f32 to vector<8x256xf32>
    %11 = arith.maximumf %9, %10 : vector<8x256xf32>
    %c0_10 = arith.constant 0 : index
    %c0_11 = arith.constant 0 : index
    %12 = vector.load %arg6[%c0_10, %c0_11] : memref<16x8xbf16, #tpu.memory_space<vmem>>, vector<16x8xbf16>
    %13 = arith.truncf %11 : vector<8x256xf32> to vector<8x256xbf16>
    %cst_12 = arith.constant dense<0.000000e+00> : vector<16x256xf32>
    %14 = tpu.matmul %12, %13, %cst_12 {dimension_numbers = #tpu.dot_dimension_numbers<[1], [0], [0], [1], [0, 0, 1, 1], [], []>} : vector<16x8xbf16>, vector<8x256xbf16>, vector<16x256xf32> -> vector<16x256xf32>
    %c0_13 = arith.constant 0 : index
    %c0_14 = arith.constant 0 : index
    %15 = vector.load %arg7[%c0_13, %c0_14] : memref<16x1xf32, #tpu.memory_space<vmem>>, vector<16x1xf32>
    %16 = vector.broadcast %15 : vector<16x1xf32> to vector<16x256xf32>
    %17 = arith.addf %14, %16 : vector<16x256xf32>
    %18 = vector.extract_strided_slice %17 {offsets = [0, 0], sizes = [8, 256], strides = [1, 1]} : vector<16x256xf32> to vector<8x256xf32>
    %19 = vector.extract_strided_slice %17 {offsets = [8, 0], sizes = [8, 256], strides = [1, 1]} : vector<16x256xf32> to vector<8x256xf32>
    %20 = arith.mulf %1, %18 : vector<8x256xf32>
    %21 = arith.addf %1, %20 : vector<8x256xf32>
    %22 = arith.addf %21, %19 : vector<8x256xf32>
    %c0_15 = arith.constant 0 : index
    %c0_16 = arith.constant 0 : index
    %c0_17 = arith.constant 0 : index
    %23 = vector.load %arg8[%c0_15, %c0_16, %c0_17] : memref<1x8x256xf32, #tpu.memory_space<vmem>>, vector<1x8x256xf32>
    %24 = vector.shape_cast %23 : vector<1x8x256xf32> to vector<8x256xf32>
    %25 = vector.shape_cast %22 : vector<8x256xf32> to vector<1x8x256xf32>
    tpu.vector_store %arg8[%c0_15, %c0_16, %c0_17], %25 {strides = array<i32>} : memref<1x8x256xf32, #tpu.memory_space<vmem>>, vector<1x8x256xf32>,
    return
  }
  func.func @transform_0(%arg0: i32, %arg1: i32) -> (i32, i32, i32) {
    %c0_i32 = arith.constant 0 : i32
    %c0_i32_0 = arith.constant 0 : i32
    return %arg0, %c0_i32, %arg1 : i32, i32, i32
  }
  func.func @transform_1(%arg0: i32, %arg1: i32) -> (i32, i32, i32) {
    %c0_i32 = arith.constant 0 : i32
    %c0_i32_0 = arith.constant 0 : i32
    return %arg0, %c0_i32, %arg1 : i32, i32, i32
  }
  func.func @transform_2(%arg0: i32, %arg1: i32) -> (i32, i32) {
    %c0_i32 = arith.constant 0 : i32
    %c0_i32_0 = arith.constant 0 : i32
    %c0_i32_1 = arith.constant 0 : i32
    return %c0_i32, %c0_i32_0 : i32, i32
  }
  func.func @transform_3(%arg0: i32, %arg1: i32) -> (i32, i32) {
    %c0_i32 = arith.constant 0 : i32
    %c0_i32_0 = arith.constant 0 : i32
    %c0_i32_1 = arith.constant 0 : i32
    return %c0_i32, %c0_i32_0 : i32, i32
  }
  func.func @transform_4(%arg0: i32, %arg1: i32) -> (i32, i32) {
    %c0_i32 = arith.constant 0 : i32
    %c0_i32_0 = arith.constant 0 : i32
    %c0_i32_1 = arith.constant 0 : i32
    return %c0_i32, %c0_i32_0 : i32, i32
  }
  func.func @transform_5(%arg0: i32, %arg1: i32) -> (i32, i32) {
    %c0_i32 = arith.constant 0 : i32
    %c0_i32_0 = arith.constant 0 : i32
    %c0_i32_1 = arith.constant 0 : i32
    return %c0_i32, %c0_i32_0 : i32, i32
  }
  func.func @transform_6(%arg0: i32, %arg1: i32) -> (i32, i32, i32) {
    %c0_i32 = arith.constant 0 : i32
    %c0_i32_0 = arith.constant 0 : i32
    return %arg0, %c0_i32, %arg1 : i32, i32, i32
  }
}

</mosaic_0001>

<bundles_post_ra>
// kernel: gbuffer_conv.1
= control target key start
LH: loop header
LB: loop body
LE: loop exit
PB: predicated region body
PF: predicated region fallthrough
CT: control target
= control target key end

     0   :  { %s670_s21 = smov 0   ;;  %s672_s22 = smov 0   ;;  %s725_s0 = inlined_call_operand.vmem [shape: f32[2,8,256], index: 0, kind: input, shape index: {}]   ;;  %s726_s1 = inlined_call_operand.vmem [shape: f32[2,4,256], index: 1, kind: input, shape index: {}]   ;;  %s727_s2 = inlined_call_operand.vmem [shape: bf16[8,4], index: 2, kind: input, shape index: {}]   ;;  %s728_s3 = inlined_call_operand.vmem [shape: f32[8,1], index: 3, kind: input, shape index: {}]   ;;  %s729_s4 = inlined_call_operand.vmem [shape: bf16[16,8], index: 4, kind: input, shape index: {}]   ;;  %s730_s5 = inlined_call_operand.vmem [shape: f32[16,1], index: 5, kind: input, shape index: {}]   ;;  %s731_s6 = inlined_call_operand.vmem [shape: f32[2,8,256], index: 6, kind: output, shape index: {}]  }
   0x1   :  { %s674_s23 = smov 0  }
   0x2 LB: > { %s28_s24 = sadd.s32 1, %s628_s22  ;;  %p562_p0 = scmp.ge.s32.totalorder %s632_s23, 1  ;;  %s632_s23 = sphi %s674_s23, %s16_s23   ;;  %s628_s22 = sphi %s672_s22, %s733_s22   ;;  %s624_s21 = sphi %s670_s21, %s732_s21  }
   0x3   : > { %p30_p1 = scmp.ge.s32.totalorder %s28_s24, 2  ;;  %p250_p2 = scmp.lt.s32.totalorder %s632_s23, 3 }
   0x5   : > { %s735_s24 = smov (%p30_p1, %s28_s24), 0  ;;  %p251_p3 = pnand %p562_p0, %p250_p2 }
   0x6   : > { %p298_p4 = scmp.lt.s32.totalorder (!%p251_p3), %s624_s21, 1 }
   0x7   : > { %254 = sbr.rel (%p251_p3) target bundleno = 312 (0x138), region = 44 }
   0xc   : > { %v634_v0 = vmov 0   ;;  %v340_v1 = vld [vmem:[%s728_s3] sm:$0xff]  ;;  %s737_s21 = smov (!%p298_p4, %s624_s21), 1  ;;  %vm350_vm0 = vcmask 1041408   ;;  %vm346_vm1 = vcmask 31744   ;;  %v390_v11 = vld [vmem:[%s730_s5 + $0x8] sm:$0xff] }
   0xd   : > { %608 = vset.pattern.permute.xlu0 %v634_v0  ;;  %609 = vset.pattern.permute.xlu1 %v634_v0  ;;  %s580_s27 = sshll.u32 %s737_s21, 3  ;;  %v389_v3 = vld [vmem:[%s730_s5] sm:$0xff]  ;;  %vm410_vm2 = vcmask 1043456   ;;  %vm406_vm3 = vcmask 64512   ;;  %s579_s15 = sshll.u32 %s737_s21, 4 }
   0xe   : > { %343 = vperm.xlu0 %608, %v340_v1   ;;  %s315_s30 = scalar_lea.vmem %s726_s1, %s580_s27  ;;  %v339_v10 = vld [vmem:[%s727_s2] sm:$0xf]  ;;  %398 = vperm.xlu1 %609, %v390_v11   ;;  %s305_s18 = scalar_lea.vmem %s725_s0, %s579_s15 }
   0xf   : > { %v330_v2 = vld [vmem:[%s315_s30] sm:$0xff]  ;;  %v329_v32 = vld [vmem:[%s305_s18 + $0x8] sm:$0xff]  ;;  %s325_s21 = scalar_lea.vmem %s731_s6, %s579_s15 }
  0x10   : > { %332 = vst [vmem:[#allocation1] ss:$2 sm:$0xff] %v330_v2  ;;  %v582_v23 = vld [vmem:[%s729_s4] sm:$0xff] }
  0x11   : > { %v328_v31 = vld [vmem:[%s305_s18] sm:$0xff] }
  0x16   : > { %393 = vperm.xlu0 %608, %v389_v3  }
  0x17   : > { %v333_v4 = vld.sshfl [vmem:[#allocation1] sm:$0xff pattern:$0x75316420]  ;;  %v334_v5 = vld.sshfl [vmem:[#allocation1 + $0x8] sm:$0xff pattern:$0x75316420] }
  0x18   : > { %v337_v6 = vpack.c.bf16 %v333_v4, %v333_v4  ;;  %v338_v7 = vpack.c.bf16 %v334_v5, %v334_v5 }
  0x1a   : > { %v352_v8 = vsel %vm350_vm0, %v337_v6, 0  ;;  %v355_v9 = vsel %vm350_vm0, %v338_v7, 0 }
  0x1b   : > { %364 = vmatpush.bf16.msra.mxu0 %v352_v8  ;;  %377 = vmatpush.bf16.msra.mxu1 %v355_v9 }
  0x1e   : > { %569 = vmatmul.msk.bf16.vlgmr.msra.gmra.mxu0 %vm346_vm1, %v339_v10  ;;  %570 = vmatmul.msk.bf16.vlgmr.msra.gmra.mxu1 %vm346_vm1, %v339_v10 }
  0x80   : > { %v344_v12 = vpop.permute.xlu0 %343  ;;  %v399_v35 = vpop.permute.xlu1 %398 }
  0x88   : > { %v394_v26 = vpop.permute.xlu0 %393 }
  0x9b   : > { %v366_v13 = vpop.f32.mrf.mxu0  ;;  %v379_v14 = vpop.f32.mrf.mxu1 }
  0x9c   : > { %v367_v15 = vadd.f32 %v366_v13, %v344_v12  ;;  %v380_v16 = vadd.f32 %v379_v14, %v344_v12 }
  0x9e   : > { %v383_v17 = vmax.f32 %v367_v15, 0.0  ;;  %v384_v18 = vmax.f32 %v380_v16, 0.0 }
  0xa0   : > { %v387_v19 = vpack.c.bf16 %v383_v17, %v383_v17  ;;  %v388_v20 = vpack.c.bf16 %v384_v18, %v384_v18 }
  0xa2   : > { %v412_v21 = vsel %vm410_vm2, %v387_v19, 0  ;;  %v415_v22 = vsel %vm410_vm2, %v388_v20, 0 }
  0xa3   : > { %v368_v24 = vpop.f32.mrf.mxu0  ;;  %v381_v25 = vpop.f32.mrf.mxu1  ;;  %424 = vmatpush.bf16.msra.mxu2 %v412_v21  ;;  %438 = vmatpush.bf16.msra.mxu3 %v415_v22 }
  0xa6   : > { %575 = vmatmul.msk.bf16.vlgmr.msra.gmra.mxu2 %vm406_vm3, %v582_v23  ;;  %576 = vmatmul.msk.bf16.vlgmr.msra.gmra.mxu3 %vm406_vm3, %v582_v23 }
 0x129   : > { %v426_v27 = vpop.f32.mrf.mxu2  ;;  %v440_v28 = vpop.f32.mrf.mxu3 }
 0x12a   : > { %v427_v29 = vadd.f32 %v426_v27, %v394_v26  ;;  %v441_v30 = vadd.f32 %v440_v28, %v394_v26 }
 0x12c   : > { %v445_v33 = vmul.f32 %v427_v29, %v328_v31  ;;  %v446_v34 = vmul.f32 %v441_v30, %v329_v32 }
 0x12e   : > { %v447_v39 = vadd.f32 %v445_v33, %v328_v31  ;;  %v448_v41 = vadd.f32 %v446_v34, %v329_v32 }
 0x131   : > { %v428_v36 = vpop.f32.mrf.mxu2  ;;  %v442_v37 = vpop.f32.mrf.mxu3 }
 0x132   : > { %v429_v38 = vadd.f32 %v428_v36, %v399_v35  ;;  %v443_v40 = vadd.f32 %v442_v37, %v399_v35 }
 0x134   : > { %v449_v42 = vadd.f32 %v447_v39, %v429_v38  ;;  %v450_v43 = vadd.f32 %v448_v41, %v443_v40 }
 0x136   : > { %451 = vst [vmem:[%s325_s21] sm:$0xff] %v449_v42 }
 0x137   : > { %452 = vst [vmem:[%s325_s21 + $0x8] sm:$0xff] %v450_v43 }
 0x138 PF: > { %s16_s23 = sadd.s32 1, %s632_s23   ;;  %s732_s21 = smov %s628_s22 }
 0x139   : > { %p13_p5 = scmp.ge.s32.totalorder %s16_s23, 4   ;;  %s733_s22 = smov %s735_s24 }
 0x13b   :  { %15 = sbr.rel (!%p13_p5) target bundleno = 2 (0x2), region = 77 }

</bundles_post_ra>
